<compile_context>
chip_gen: v5e
topology: v5e:2x2
jax: 0.10.0
libtpu: 0.0.40
codegen_flags: <defaults>
</compile_context>

<pallas_src>
import jax
import jax.numpy as jnp
from jax.experimental import pallas as pl
from jax.experimental.pallas import tpu as pltpu


# ----------------------------------------------------------------------------- #
# Kernel
# ----------------------------------------------------------------------------- #
def _make_kernel(elementwise_dtype):
    ew = None if elementwise_dtype is None else jnp.dtype(elementwise_dtype)
    use_lowp = ew is not None and ew != jnp.dtype(jnp.float32)

    def kernel(h_ref, enc_ref, mask_ref, wh_ref, we_ref, b_ref, v_ref,
               out_ref, hxb_ref):
        s_idx = pl.program_id(1)
        ts, tb, E = enc_ref.shape
        D = we_ref.shape[1]

        # hidden @ W_h + bias once per batch tile (f32 for accuracy; tiny cost).
        @pl.when(s_idx == 0)
        def _init():
            hx = jnp.dot(h_ref[...], wh_ref[...],
                         preferred_element_type=jnp.float32)        # (tb, D)
            hxb_ref[...] = hx + b_ref[...]

        # (ts, tb, E) -> (ts*tb, E): metadata-only when tb % 8 == 0 (sublane-dense
        # batch tile); for tiny demo batches this is a small VMEM-local relayout.
        enc2 = enc_ref[...].reshape(ts * tb, E)
        ex = jnp.dot(enc2, we_ref[...],
                     preferred_element_type=jnp.float32)             # (ts*tb, D)
        pre = ex.reshape(ts, tb, D) + hxb_ref[...][None, :, :]
        v_row = v_ref[...][None, :, :]                                # (1, 1, D) f32
        if use_lowp:
            # v6e/v7x only: tanh + elementwise in bf16 (bf16 EUP/VPU); the
            # D-reduction and everything downstream stay f32.
            energy = jnp.tanh(pre.astype(ew))
            prod = (energy * v_row.astype(ew)).astype(jnp.float32)
        else:
            energy = jnp.tanh(pre)
            prod = energy * v_row
        # v-projection as VPU multiply + cross-lane reduction (XLU slot).  The MXU
        # alternative (energy @ v padded to (D,128)) only pays off if profiling
        # shows VALU/XLU saturating, so it is not used by default.
        score = jnp.sum(prod, axis=-1)                                # (ts, tb) f32
        out_ref[:, pl.ds(s_idx, 1), :] = score.T[:, None, :]          # raw scores

        # Last src tile: mask fill + softmax over the full (padded) src length,
        # in place on the resident output block.
        @pl.when(s_idx == pl.num_programs(1) - 1)
        def _finalize():
            sc = out_ref[...]                                         # (tb, nst, ts)
            sc = jnp.where(mask_ref[...] == 0, jnp.float32(-1e10), sc)
            m = jnp.max(jnp.max(sc, axis=2, keepdims=True), axis=1, keepdims=True)
            e = jnp.exp(sc - m)
            den = jnp.sum(jnp.sum(e, axis=2, keepdims=True), axis=1, keepdims=True)
            out_ref[...] = e / den            # exact division (rows sum to 1)

    return kernel


# ----------------------------------------------------------------------------- #
# Tiling / VMEM budgeting
# ----------------------------------------------------------------------------- #
def _choose_tiles(S, B, E, D, enc_itemsize, we_itemsize, budget_bytes, src_tile):
    # Batch tile: multiples of 8 with >= 2 tiles when the batch allows it, so the
    # "parallel" grid axis has extent >= 2 (both v7x TensorCores get work) and
    # every in-kernel layout stays sublane-dense.  Small batches stay as one tile.
    if B % 8 == 0 and B >= 16:
        tb = max(8, ((B // 2) // 8) * 8)
        while B % tb:
            tb -= 8
    else:
        tb = B

    if src_tile is not None:
        ts = int(src_tile)
        s_pad = ((S + ts - 1) // ts) * ts
        return tb, ts, s_pad // ts, s_pad

    # Budget the whole VMEM picture (double-buffered weights, resident mask/out
    # slabs, scratch), not just the encoder tile.
    s_upper = S + 512
    fixed = (2 * E * D * we_itemsize          # W_e (double-buffered)
             + 2 * D * D * 4                  # W_h
             + 2 * tb * D * 4                 # hidden
             + 4 * D * 4                      # bias + v
             + 2 * 2 * tb * s_upper * 4       # mask + out resident slabs
             + tb * D * 4)                    # hxb scratch
    # TODO(synk): give the constant-index operands pipeline_mode=pl.Buffered(1)
    # to reclaim their second buffer once single-buffering is verified to lower.
    ts_max = max(8, (budget_bytes - fixed) // (2 * tb * E * enc_itemsize))
    if S <= ts_max:
        return tb, S, 1, S                    # single full tile, no padding
    # Lane-dense multi-tile: ts is a multiple of 128; prefer an exact divisor of
    # S (no padding copy), otherwise pad S once up to a multiple of ts.
    divisors = [t for t in range(128, int(ts_max) + 1, 128) if S % t == 0]
    if divisors:
        ts = max(divisors)
        s_pad = S
    else:
        ts = max(128, (int(ts_max) // 128) * 128)
        s_pad = ((S + ts - 1) // ts) * ts
    return tb, ts, s_pad // ts, s_pad


# ----------------------------------------------------------------------------- #
# Init-time parameter preparation (hoisted out of the per-call wrapper)
# ----------------------------------------------------------------------------- #
def prepare_attention_params(attn_w, attn_b, v_w, *, compute_dtype=jnp.float32):
    """attn_w: (D, E+D) = nn.Linear(enc_hid + dec_hid, dec_hid).weight;
    attn_b: (D,); v_w: (1, D) = nn.Linear(dec_hid, 1, bias=False).weight.
    The cat order in the reference is (hidden, encoder_outputs), so the first D
    input features act on `hidden` and the remaining E on encoder_outputs.
    `compute_dtype` applies only to the encoder-side projection W_e (the MXU
    stream); the hidden projection, bias and v stay f32."""
    D = attn_b.shape[0]
    w_t = attn_w.T                                   # (D + E, D)
    wh = w_t[:D, :].astype(jnp.float32)              # (D, D)
    we = w_t[D:, :].astype(compute_dtype)            # (E, D)
    b2 = attn_b.reshape(1, D).astype(jnp.float32)
    v2 = v_w.reshape(1, D).astype(jnp.float32)
    return wh, we, b2, v2


# ----------------------------------------------------------------------------- #
# Forward wrapper
# ----------------------------------------------------------------------------- #
def attention_forward(hidden, encoder_outputs, mask, params, *,
                      src_tile=None, elementwise_dtype=None,
                      vmem_budget_bytes=40 * 1024 * 1024):
    """hidden: (B, D); encoder_outputs: (S, B, E) in its native PyTorch layout
    (supply it already in bf16 on v5e/v6e/v7x to halve its HBM traffic — the
    wrapper never casts the full encoder tensor); mask: (B, S), 0 => padding.
    Returns softmax attention weights, shape (B, S), float32."""
    wh, we, b2, v2 = params
    S, B, E = encoder_outputs.shape
    D = wh.shape[1]

    # Weight-sized fix-ups only (cheap); the encoder tensor is never touched here.
    if we.dtype != encoder_outputs.dtype:
        we = we.astype(encoder_outputs.dtype)
    hidden = hidden.astype(jnp.float32)
    mask_i = mask.astype(jnp.int32)

    tb, ts, nst, s_pad = _choose_tiles(
        S, B, E, D, encoder_outputs.dtype.itemsize, we.dtype.itemsize,
        vmem_budget_bytes, src_tile)

    if s_pad > S:
        # One-time pad so every src tile is full and lane-dense; the padded tail
        # is masked (mask == 0 -> -1e10 -> ~0 weight) and sliced off below.
        encoder_outputs = jnp.pad(encoder_outputs,
                                  ((0, s_pad - S), (0, 0), (0, 0)))
        mask_i = jnp.pad(mask_i, ((0, 0), (0, s_pad - S)))

    mask3 = mask_i.reshape(B, nst, ts)               # contiguous, metadata-only

    vmem_est = (2 * ts * tb * E * encoder_outputs.dtype.itemsize      # enc tile x2
                + 2 * E * D * we.dtype.itemsize                       # W_e x2
                + 2 * D * D * 4 + 2 * tb * D * 4 + 4 * D * 4          # W_h, h, b, v
                + 2 * 2 * tb * nst * ts * 4                           # mask + out
                + tb * D * 4)                                         # hxb scratch
    vmem_limit = None
    if vmem_est > 30 * 1024 * 1024:
        # Cap below v7x's 64 MiB physical VMEM; v5e/v6e (128 MiB) have headroom.
        vmem_limit = min(int(vmem_est * 5) // 4, 56 * 1024 * 1024)

    kernel = _make_kernel(elementwise_dtype)
    out3 = pl.pallas_call(
        kernel,
        out_shape=jax.ShapeDtypeStruct((B, nst, ts), jnp.float32),
        grid_spec=pltpu.PrefetchScalarGridSpec(
            num_scalar_prefetch=0,
            grid=(B // tb, nst),
            in_specs=[
                pl.BlockSpec((tb, D), lambda b, s: (b, 0)),            # hidden
                pl.BlockSpec((ts, tb, E), lambda b, s: (s, b, 0)),     # enc (S,B,E)
                pl.BlockSpec((tb, nst, ts), lambda b, s: (b, 0, 0)),   # mask
                pl.BlockSpec((D, D), lambda b, s: (0, 0)),             # W_h
                pl.BlockSpec((E, D), lambda b, s: (0, 0)),             # W_e
                pl.BlockSpec((1, D), lambda b, s: (0, 0)),             # bias
                pl.BlockSpec((1, D), lambda b, s: (0, 0)),             # v
            ],
            out_specs=pl.BlockSpec((tb, nst, ts), lambda b, s: (b, 0, 0)),
            scratch_shapes=[pltpu.VMEM((tb, D), jnp.float32)],         # hx + bias
        ),
        compiler_params=pltpu.CompilerParams(
            dimension_semantics=("parallel", "arbitrary"),
            vmem_limit_bytes=vmem_limit),
    )(hidden, encoder_outputs, mask3, wh, we, b2, v2)

    out = out3.reshape(B, nst * ts)
    if s_pad > S:
        out = out[:, :S]
    return out


# ----------------------------------------------------------------------------- #
# Self-test
# ----------------------------------------------------------------------------- #
if __name__ == "__main__":
    B, S, E, D = 2, 8, 32, 32   # batch, src_len, enc_hid_dim, dec_hid_dim

    key = jax.random.PRNGKey(0)
    k1, k2, k3, k4, k5 = jax.random.split(key, 5)

    hidden = jax.random.normal(k1, (B, D), dtype=jnp.float32)
    encoder_outputs = jax.random.normal(k2, (S, B, E), dtype=jnp.float32)
    mask = jnp.ones((B, S), dtype=jnp.int32).at[1, 6:].set(0)   # last 2 padded

    # nn.Linear-style init: U(-1/sqrt(fan_in), 1/sqrt(fan_in))
    bound = float(1.0 / (E + D) ** 0.5)
    attn_w = jax.random.uniform(k3, (D, E + D), minval=-bound, maxval=bound,
                                dtype=jnp.float32)
    attn_b = jax.random.uniform(k4, (D,), minval=-bound, maxval=bound,
                                dtype=jnp.float32)
    bound_v = float(1.0 / D ** 0.5)
    v_w = jax.random.uniform(k5, (1, D), minval=-bound_v, maxval=bound_v,
                             dtype=jnp.float32)

    def ref_attention(hid, enc, msk, aw, ab, vw):
        S_, B_, _ = enc.shape
        hid_rep = jnp.broadcast_to(hid[None, :, :], (S_, B_, hid.shape[1]))
        cat = jnp.concatenate([hid_rep, enc], axis=2)
        energy = jnp.tanh(cat @ aw.T + ab)
        attn = (energy @ vw.T)[:, :, 0].T
        attn = jnp.where(msk == 0, -1e10, attn)
        return jax.nn.softmax(attn, axis=1)

    ref = ref_attention(hidden, encoder_outputs, mask, attn_w, attn_b, v_w)

    # f32 path (weights prepared once at "init" time).
    params = prepare_attention_params(attn_w, attn_b, v_w)
    out = jax.block_until_ready(
        attention_forward(hidden, encoder_outputs, mask, params))
    assert out.shape == (B, S)
    assert jnp.allclose(out, ref, atol=1e-3, rtol=1e-3), \
        float(jnp.max(jnp.abs(out - ref)))

    # bf16 MXU-input path: the encoder is supplied already in bf16 (no per-call
    # wrapper cast); hidden projection, accumulation, tanh and softmax stay f32.
    params_bf16 = prepare_attention_params(attn_w, attn_b, v_w,
                                           compute_dtype=jnp.bfloat16)
    enc_bf16 = encoder_outputs.astype(jnp.bfloat16)   # done upstream, once
    out_bf16 = jax.block_until_ready(
        attention_forward(hidden, enc_bf16, mask, params_bf16))
    assert jnp.allclose(out_bf16, ref, atol=3e-2), \
        float(jnp.max(jnp.abs(out_bf16 - ref)))

    # Multi-tile path: src_len=200 padded to 2 lane-dense tiles of 128 (exercises
    # the resident score accumulator across src tiles plus the padding/mask path).
    S2, E2, D2 = 200, 64, 48
    kk = jax.random.split(jax.random.PRNGKey(1), 5)
    hidden2 = jax.random.normal(kk[0], (B, D2), dtype=jnp.float32)
    enc_big = jax.random.normal(kk[1], (S2, B, E2), dtype=jnp.float32)
    mask2 = jnp.ones((B, S2), dtype=jnp.int32).at[0, 150:].set(0)
    bnd2 = float(1.0 / (E2 + D2) ** 0.5)
    attn_w2 = jax.random.uniform(kk[2], (D2, E2 + D2), minval=-bnd2, maxval=bnd2,
                                 dtype=jnp.float32)
    attn_b2 = jax.random.uniform(kk[3], (D2,), minval=-bnd2, maxval=bnd2,
                                 dtype=jnp.float32)
    bnd_v2 = float(1.0 / D2 ** 0.5)
    v_w2 = jax.random.uniform(kk[4], (1, D2), minval=-bnd_v2, maxval=bnd_v2,
                              dtype=jnp.float32)

    ref2 = ref_attention(hidden2, enc_big, mask2, attn_w2, attn_b2, v_w2)
    params2 = prepare_attention_params(attn_w2, attn_b2, v_w2)
    out2 = jax.block_until_ready(
        attention_forward(hidden2, enc_big, mask2, params2, src_tile=128))
    assert out2.shape == (B, S2)
    assert jnp.allclose(out2, ref2, atol=1e-3, rtol=1e-3), \
        float(jnp.max(jnp.abs(out2 - ref2)))

    print("KERNEL_OK")
</pallas_src>

<mosaic_0001>
module attributes {stable_mosaic.version = 11 : i64} {
  func.func @kernel(%arg0: i32, %arg1: i32, %arg2: memref<2x32xf32, #tpu.memory_space<vmem>>, %arg3: memref<8x2x32xf32, #tpu.memory_space<vmem>>, %arg4: memref<2x1x8xi32, #tpu.memory_space<vmem>>, %arg5: memref<32x32xf32, #tpu.memory_space<vmem>>, %arg6: memref<32x32xf32, #tpu.memory_space<vmem>>, %arg7: memref<1x32xf32, #tpu.memory_space<vmem>>, %arg8: memref<1x32xf32, #tpu.memory_space<vmem>>, %arg9: memref<2x1x8xf32, #tpu.memory_space<vmem>>, %arg10: memref<2x32xf32, #tpu.memory_space<vmem>>) attributes {dimension_semantics = [#tpu.dimension_semantics<parallel>, #tpu.dimension_semantics<arbitrary>], iteration_bounds = array<i64: 1, 1>, scalar_prefetch = 0 : i64, scratch_operands = 1 : i64, tpu.core_type = #tpu.core_type<tc>, window_params = [{transform_indices = @transform_0, window_bounds = array<i64: 2, 32>}, {transform_indices = @transform_1, window_bounds = array<i64: 8, 2, 32>}, {transform_indices = @transform_2, window_bounds = array<i64: 2, 1, 8>}, {pipeline_mode = #tpu.pipeline_mode<synchronous>, transform_indices = @transform_3, window_bounds = array<i64: 32, 32>}, {pipeline_mode = #tpu.pipeline_mode<synchronous>, transform_indices = @transform_4, window_bounds = array<i64: 32, 32>}, {pipeline_mode = #tpu.pipeline_mode<synchronous>, transform_indices = @transform_5, window_bounds = array<i64: 1, 32>}, {pipeline_mode = #tpu.pipeline_mode<synchronous>, transform_indices = @transform_6, window_bounds = array<i64: 1, 32>}, {transform_indices = @transform_7, window_bounds = array<i64: 2, 1, 8>}]} {
    %c0_i32 = arith.constant 0 : i32
    %0 = arith.cmpi eq, %arg1, %c0_i32 : i32
    %1 = arith.extui %0 : i1 to i32
    %c0_i32_0 = arith.constant 0 : i32
    %2 = arith.cmpi ne, %1, %c0_i32_0 : i32
    scf.if %2 {
      %c0_14 = arith.constant 0 : index
      %c0_15 = arith.constant 0 : index
      %25 = vector.load %arg2[%c0_14, %c0_15] : memref<2x32xf32, #tpu.memory_space<vmem>>, vector<2x32xf32>
      %c0_16 = arith.constant 0 : index
      %c0_17 = arith.constant 0 : index
      %26 = vector.load %arg5[%c0_16, %c0_17] : memref<32x32xf32, #tpu.memory_space<vmem>>, vector<32x32xf32>
      %cst_18 = arith.constant dense<0.000000e+00> : vector<2x32xf32>
      %27 = tpu.matmul %25, %26, %cst_18 {dimension_numbers = #tpu.dot_dimension_numbers<[1], [0], [0], [1], [0, 0, 1, 1], [], []>} : vector<2x32xf32>, vector<32x32xf32>, vector<2x32xf32> -> vector<2x32xf32>
      %c0_19 = arith.constant 0 : index
      %c0_20 = arith.constant 0 : index
      %28 = vector.load %arg7[%c0_19, %c0_20] : memref<1x32xf32, #tpu.memory_space<vmem>>, vector<1x32xf32>
      %29 = vector.broadcast %28 : vector<1x32xf32> to vector<2x32xf32>
      %30 = arith.addf %27, %29 : vector<2x32xf32>
      %c0_21 = arith.constant 0 : index
      %c0_22 = arith.constant 0 : index
      %31 = vector.load %arg10[%c0_21, %c0_22] : memref<2x32xf32, #tpu.memory_space<vmem>>, vector<2x32xf32>
      tpu.vector_store %arg10[%c0_21, %c0_22], %30 {strides = array<i32>} : memref<2x32xf32, #tpu.memory_space<vmem>>, vector<2x32xf32>,
    } else {
    }
    %c0 = arith.constant 0 : index
    %c0_1 = arith.constant 0 : index
    %c0_2 = arith.constant 0 : index
    %3 = vector.load %arg3[%c0, %c0_1, %c0_2] : memref<8x2x32xf32, #tpu.memory_space<vmem>>, vector<8x2x32xf32>
    %4 = vector.shape_cast %3 : vector<8x2x32xf32> to vector<16x32xf32>
    %c0_3 = arith.constant 0 : index
    %c0_4 = arith.constant 0 : index
    %5 = vector.load %arg6[%c0_3, %c0_4] : memref<32x32xf32, #tpu.memory_space<vmem>>, vector<32x32xf32>
    %cst = arith.constant dense<0.000000e+00> : vector<16x32xf32>
    %6 = tpu.matmul %4, %5, %cst {dimension_numbers = #tpu.dot_dimension_numbers<[1], [0], [0], [1], [0, 0, 1, 1], [], []>} : vector<16x32xf32>, vector<32x32xf32>, vector<16x32xf32> -> vector<16x32xf32>
    %7 = vector.shape_cast %6 : vector<16x32xf32> to vector<8x2x32xf32>
    %c0_5 = arith.constant 0 : index
    %c0_6 = arith.constant 0 : index
    %8 = vector.load %arg10[%c0_5, %c0_6] : memref<2x32xf32, #tpu.memory_space<vmem>>, vector<2x32xf32>
    %9 = vector.shape_cast %8 : vector<2x32xf32> to vector<1x2x32xf32>
    %10 = vector.broadcast %9 : vector<1x2x32xf32> to vector<8x2x32xf32>
    %11 = arith.addf %7, %10 : vector<8x2x32xf32>
    %c0_7 = arith.constant 0 : index
    %c0_8 = arith.constant 0 : index
    %12 = vector.load %arg8[%c0_7, %c0_8] : memref<1x32xf32, #tpu.memory_space<vmem>>, vector<1x32xf32>
    %13 = vector.shape_cast %12 : vector<1x32xf32> to vector<1x1x32xf32>
    %14 = math.tanh %11 : vector<8x2x32xf32>
    %15 = vector.broadcast %13 : vector<1x1x32xf32> to vector<8x2x32xf32>
    %16 = arith.mulf %14, %15 : vector<8x2x32xf32>
    %cst_9 = arith.constant dense<0.000000e+00> : vector<8x2xf32>
    %17 = vector.multi_reduction <add>, %16, %cst_9 [2] : vector<8x2x32xf32> to vector<8x2xf32>
    %18 = tpu.transpose %17, [1, 0] : vector<8x2xf32> -> vector<2x8xf32>
    %19 = vector.shape_cast %18 : vector<2x8xf32> to vector<2x1x8xf32>
    %c0_10 = arith.constant 0 : index
    %20 = arith.index_cast %arg1 : i32 to index
    %c0_11 = arith.constant 0 : index
    %21 = vector.load %arg9[%c0_10, %20, %c0_11] : memref<2x1x8xf32, #tpu.memory_space<vmem>>, vector<2x1x8xf32>
    tpu.vector_store %arg9[%c0_10, %20, %c0_11], %19 {strides = array<i32>} : memref<2x1x8xf32, #tpu.memory_space<vmem>>, vector<2x1x8xf32>,
    %c0_i32_12 = arith.constant 0 : i32
    %22 = arith.cmpi eq, %arg1, %c0_i32_12 : i32
    %23 = arith.extui %22 : i1 to i32
    %c0_i32_13 = arith.constant 0 : i32
    %24 = arith.cmpi ne, %23, %c0_i32_13 : i32
    scf.if %24 {
      %c0_14 = arith.constant 0 : index
      %c0_15 = arith.constant 0 : index
      %c0_16 = arith.constant 0 : index
      %25 = vector.load %arg9[%c0_14, %c0_15, %c0_16] : memref<2x1x8xf32, #tpu.memory_space<vmem>>, vector<2x1x8xf32>
      %c0_17 = arith.constant 0 : index
      %c0_18 = arith.constant 0 : index
      %c0_19 = arith.constant 0 : index
      %26 = vector.load %arg4[%c0_17, %c0_18, %c0_19] : memref<2x1x8xi32, #tpu.memory_space<vmem>>, vector<2x1x8xi32>
      %c0_i32_20 = arith.constant 0 : i32
      %27 = vector.broadcast %c0_i32_20 : i32 to vector<2x1x8xi32>
      %28 = arith.cmpi eq, %26, %27 : vector<2x1x8xi32>
      %cst_21 = arith.constant -1.000000e+10 : f32
      %29 = vector.broadcast %cst_21 : f32 to vector<2x1x8xf32>
      %30 = arith.select %28, %29, %25 : vector<2x1x8xi1>, vector<2x1x8xf32>
      %cst_22 = arith.constant dense<0xFF800000> : vector<2x1xf32>
      %31 = vector.multi_reduction <maximumf>, %30, %cst_22 [2] : vector<2x1x8xf32> to vector<2x1xf32>
      %32 = vector.shape_cast %31 : vector<2x1xf32> to vector<2x1x1xf32>
      %cst_23 = arith.constant dense<0xFF800000> : vector<2x1xf32>
      %33 = vector.multi_reduction <maximumf>, %32, %cst_23 [1] : vector<2x1x1xf32> to vector<2x1xf32>
      %34 = vector.shape_cast %33 : vector<2x1xf32> to vector<2x1x1xf32>
      %35 = vector.broadcast %34 : vector<2x1x1xf32> to vector<2x1x8xf32>
      %36 = arith.subf %30, %35 : vector<2x1x8xf32>
      %37 = math.exp %36 : vector<2x1x8xf32>
      %cst_24 = arith.constant dense<0.000000e+00> : vector<2x1xf32>
      %38 = vector.multi_reduction <add>, %37, %cst_24 [2] : vector<2x1x8xf32> to vector<2x1xf32>
      %39 = vector.shape_cast %38 : vector<2x1xf32> to vector<2x1x1xf32>
      %cst_25 = arith.constant dense<0.000000e+00> : vector<2x1xf32>
      %40 = vector.multi_reduction <add>, %39, %cst_25 [1] : vector<2x1x1xf32> to vector<2x1xf32>
      %41 = vector.shape_cast %40 : vector<2x1xf32> to vector<2x1x1xf32>
      %42 = vector.broadcast %41 : vector<2x1x1xf32> to vector<2x1x8xf32>
      %43 = arith.divf %37, %42 : vector<2x1x8xf32>
      %c0_26 = arith.constant 0 : index
      %c0_27 = arith.constant 0 : index
      %c0_28 = arith.constant 0 : index
      %44 = vector.load %arg9[%c0_26, %c0_27, %c0_28] : memref<2x1x8xf32, #tpu.memory_space<vmem>>, vector<2x1x8xf32>
      tpu.vector_store %arg9[%c0_26, %c0_27, %c0_28], %43 {strides = array<i32>} : memref<2x1x8xf32, #tpu.memory_space<vmem>>, vector<2x1x8xf32>,
    } else {
    }
    return
  }
  func.func @transform_0(%arg0: i32, %arg1: i32) -> (i32, i32) {
    %c0_i32 = arith.constant 0 : i32
    %c0_i32_0 = arith.constant 0 : i32
    return %arg0, %c0_i32 : i32, i32
  }
  func.func @transform_1(%arg0: i32, %arg1: i32) -> (i32, i32, i32) {
    %c0_i32 = arith.constant 0 : i32
    %c0_i32_0 = arith.constant 0 : i32
    return %arg1, %arg0, %c0_i32 : i32, i32, i32
  }
  func.func @transform_2(%arg0: i32, %arg1: i32) -> (i32, i32, i32) {
    %c0_i32 = arith.constant 0 : i32
    %c0_i32_0 = arith.constant 0 : i32
    %c0_i32_1 = arith.constant 0 : i32
    return %arg0, %c0_i32, %c0_i32_0 : i32, i32, i32
  }
  func.func @transform_3(%arg0: i32, %arg1: i32) -> (i32, i32) {
    %c0_i32 = arith.constant 0 : i32
    %c0_i32_0 = arith.constant 0 : i32
    %c0_i32_1 = arith.constant 0 : i32
    return %c0_i32, %c0_i32_0 : i32, i32
  }
  func.func @transform_4(%arg0: i32, %arg1: i32) -> (i32, i32) {
    %c0_i32 = arith.constant 0 : i32
    %c0_i32_0 = arith.constant 0 : i32
    %c0_i32_1 = arith.constant 0 : i32
    return %c0_i32, %c0_i32_0 : i32, i32
  }
  func.func @transform_5(%arg0: i32, %arg1: i32) -> (i32, i32) {
    %c0_i32 = arith.constant 0 : i32
    %c0_i32_0 = arith.constant 0 : i32
    %c0_i32_1 = arith.constant 0 : i32
    return %c0_i32, %c0_i32_0 : i32, i32
  }
  func.func @transform_6(%arg0: i32, %arg1: i32) -> (i32, i32) {
    %c0_i32 = arith.constant 0 : i32
    %c0_i32_0 = arith.constant 0 : i32
    %c0_i32_1 = arith.constant 0 : i32
    return %c0_i32, %c0_i32_0 : i32, i32
  }
  func.func @transform_7(%arg0: i32, %arg1: i32) -> (i32, i32, i32) {
    %c0_i32 = arith.constant 0 : i32
    %c0_i32_0 = arith.constant 0 : i32
    %c0_i32_1 = arith.constant 0 : i32
    return %arg0, %c0_i32, %c0_i32_0 : i32, i32, i32
  }
}

</mosaic_0001>

<bundles_post_ra>
// kernel: tpu_custom_call.1
= control target key start
LH: loop header
LB: loop body
LE: loop exit
PB: predicated region body
PF: predicated region fallthrough
CT: control target
= control target key end

     0   :  { %12 = vsyncpa [#allocation4], 0  ;;  %s730_s0 = inlined_call_operand.hbm [shape: f32[2,32], index: 0, kind: input, shape index: {}]   ;;  %s731_s1 = inlined_call_operand.hbm [shape: f32[8,2,32], index: 1, kind: input, shape index: {}]   ;;  %s732_s2 = inlined_call_operand.hbm [shape: s32[2,1,8], index: 2, kind: input, shape index: {}]   ;;  %s733_s3 = inlined_call_operand.hbm [shape: f32[32,32], index: 3, kind: input, shape index: {}]   ;;  %s734_s4 = inlined_call_operand.hbm [shape: f32[32,32], index: 4, kind: input, shape index: {}]   ;;  %s735_s5 = inlined_call_operand.vmem [shape: f32[1,32], index: 5, kind: input, shape index: {}]   ;;  %s736_s6 = inlined_call_operand.vmem [shape: f32[1,32], index: 6, kind: input, shape index: {}]   ;;  %s737_s7 = inlined_call_operand.hbm [shape: f32[2,1,8], index: 7, kind: output, shape index: {}]  }
   0x1   :  { %13 = vsyncpa [#allocation7], 0 }
   0x2   :  { %14 = vsyncpa [#allocation10], 0  ;;  %s31_s26 = sshll.u32 %s731_s1, 4  ;;  %s32_s26 = int_to_ptr.hbm [resolvable:$true] %s31_s26 }
   0x3   :  { %15 = vsyncpa [#allocation5], 0  ;;  %s628_s27 = smov [#allocation6]   ;;  %s57_s8 = sshll.u32 %s733_s3, 4  ;;  %s58_s8 = int_to_ptr.hbm [resolvable:$true] %s57_s8 }
   0x4   :  { %s33_s28 = sshll.u32 %s628_s27, 4  ;;  %s629_s9 = smov 32   ;;  %s34_s28 = int_to_ptr.vmem [resolvable:$true] %s33_s28 }
   0x5   :  { %s630_s10 = smov 2   ;;  %s631_s11 = smov [#allocation9]  }
   0x6   :  { %39 = dma.hbm_to_vmem [thread:$0]  %s32_s26, 256, %s34_s28, [#allocation7], %s629_s9, %s629_s9, %s630_s10  }
   0x7   :  { %s59_s12 = sshll.u32 %s631_s11, 4  ;;  %s632_s13 = smov 128   ;;  %s60_s12 = int_to_ptr.vmem [resolvable:$true] %s59_s12 }
   0x8   :  { %s633_s14 = smov 8   ;;  %s21_s16 = sshll.u32 %s730_s0, 4  ;;  %s22_s16 = int_to_ptr.hbm [resolvable:$true] %s21_s16 }
   0x9   :  { %65 = dma.hbm_to_vmem [thread:$0]  %s58_s8, 512, %s60_s12, [#allocation10], %s632_s13, %s632_s13, %s633_s14  }
   0xa   :  { %s634_s17 = smov [#allocation3]   ;;  %s44_s20 = sshll.u32 %s732_s2, 4  ;;  %s45_s20 = int_to_ptr.hbm [resolvable:$true] %s44_s20 }
   0xb   :  { %s23_s18 = sshll.u32 %s634_s17, 4  ;;  %s635_s21 = smov [#allocation8]   ;;  %s24_s18 = int_to_ptr.vmem [resolvable:$true] %s23_s18 }
   0xc   :  { %26 = dma.hbm_to_vmem [thread:$0]  %s22_s16, 32, %s24_s18, [#allocation4]  }
   0xd   :  { %s46_s22 = sshll.u32 %s635_s21, 4  ;;  %s636_s23 = smov 16   ;;  %s47_s22 = int_to_ptr.vmem [resolvable:$true] %s46_s22 }
   0xe   :  { %s637_s24 = smov 1   ;;  %s70_s26 = sshll.u32 %s734_s4, 4  ;;  %s71_s26 = int_to_ptr.hbm [resolvable:$true] %s70_s26 }
   0xf   :  { %52 = dma.hbm_to_vmem [thread:$0]  %s45_s20, 32, %s47_s22, [#allocation7], %s636_s23, %s636_s23, %s637_s24  }
  0x10   :  { %s638_s27 = smov [#allocation11]  }
  0x11   :  { %s72_s28 = sshll.u32 %s638_s27, 4  ;;  %s73_s28 = int_to_ptr.vmem [resolvable:$true] %s72_s28 }
  0x12   :  { %78 = dma.hbm_to_vmem [thread:$0]  %s71_s26, 512, %s73_s28, [#allocation10], %s632_s13, %s632_s13, %s633_s14  }
  0x13   :  { %620 = dma.done.wait [#allocation4], 32  }
  0x14   :  { %621 = vsyncadd [#allocation4], 4294967264 }
  0x15   :  { %622 = dma.done.wait [#allocation7], 288  }
  0x16   :  { %623 = vsyncadd [#allocation7], 4294967008 }
  0x17   :  { %624 = dma.done.wait [#allocation10], 1024  }
  0x18   :  { %625 = vsyncadd [#allocation10], 4294966272  ;;  %v111_v0 = vld [vmem:[#allocation9 + $0x18] sm:$0xff]  ;;  %v110_v1 = vld [vmem:[#allocation9 + $0x10] sm:$0xff]  ;;  %vm116_vm0 = vcmask 261120   ;;  %vm140_vm1 = vcmask 254976  }
  0x19   :  { %v153_v2 = vld [vmem:[#allocation11 + $0x18] sm:$0xff]  ;;  %132 = vmatpush.msra.mxu0 %v111_v0  ;;  %v152_v3 = vld [vmem:[#allocation11 + $0x10] sm:$0xff]  ;;  %v109_v4 = vld [vmem:[#allocation9 + $0x8] sm:$0xff]  ;;  %vm293_vm2 = vcmask 1041409   ;;  %vm295_vm3 = vcmask 1042434   ;;  %vm297_vm4 = vcmask 1043459  }
  0x1a   :  { %433 = vmatpush.msra.mxu2 %v153_v2  ;;  %v151_v5 = vld [vmem:[#allocation11 + $0x8] sm:$0xff]  ;;  %196 = vmatpush.msra.mxu1 %v153_v2  ;;  %v146_v6 = vld [vmem:[#allocation6 + $0x8] sm:$0x3]  ;;  %v147_v7 = vld [vmem:[#allocation6 + $0xa] sm:$0x3]  ;;  %vm299_vm5 = vcmask 1044484  }
  0x1b   :  { %133 = vmatpush.msra.mxu0 %v110_v1  ;;  %v148_v8 = vld [vmem:[#allocation6 + $0xc] sm:$0x3]  ;;  %v108_v9 = vld [vmem:[#allocation9] sm:$0xff]  ;;  %v149_v11 = vld [vmem:[#allocation6 + $0xe] sm:$0x3]  ;;  %v283_v1 = vlaneseq  ;;  %vm301_vm6 = vcmask 1045509  }
  0x1c   :  { %434 = vmatpush.msra.mxu2 %v152_v3  ;;  %v150_v10 = vld [vmem:[#allocation11] sm:$0xff]  ;;  %170 = vst [vmem:[#allocation1 + $0x20] ss:$4 sm:$0xff] %v146_v6  ;;  %197 = vmatpush.msra.mxu1 %v152_v3  ;;  %v107_v12 = vld [vmem:[#allocation3] sm:$0x3]  ;;  %vm303_vm7 = vcmask 1046534  }
  0x1d   :  { %134 = vmatpush.msra.mxu0 %v109_v4  ;;  %172 = vst [vmem:[#allocation1 + $0x21] ss:$4 sm:$0xff] %v147_v7  ;;  %v142_v13 = vld [vmem:[#allocation6] sm:$0x3]  ;;  %v143_v14 = vld [vmem:[#allocation6 + $0x2] sm:$0x3] }
  0x1e   :  { %435 = vmatpush.msra.mxu2 %v151_v5  ;;  %174 = vst [vmem:[#allocation1 + $0x22] ss:$4 sm:$0xff] %v148_v8  ;;  %198 = vmatpush.msra.mxu1 %v151_v5  ;;  %v144_v15 = vld [vmem:[#allocation6 + $0x4] sm:$0x3]  ;;  %v145_v16 = vld [vmem:[#allocation6 + $0x6] sm:$0x3] }
  0x1f   :  { %135 = vmatpush.msra.mxu0 %v108_v9  ;;  %176 = vst [vmem:[#allocation1 + $0x23] ss:$4 sm:$0xff] %v149_v11  ;;  %v450_v19 = vld [vmem:[%s735_s5] ss:$0 sm:$0xff]  ;;  %v284_v3 = vand.u32 127, %v283_v1  ;;  %vm305_vm8 = vcmask 1047559  }
  0x20   :  { %436 = vmatpush.msra.mxu2 %v150_v10  ;;  %430 = vmatmul.msk.f32.vlgmr.msra.gmra.mxu0 %vm116_vm0, %v107_v12  ;;  %162 = vst [vmem:[#allocation1] ss:$4 sm:$0xff] %v142_v13  ;;  %v451_v34 = vld [vmem:[%s736_s6] ss:$0 sm:$0xff]  ;;  %vm343_vm9 = vcmask 57344   ;;  %s639_s6 = smov [#allocation12]  }
  0x21   :  { %199 = vmatpush.msra.mxu1 %v150_v10  ;;  %164 = vst [vmem:[#allocation1 + $0x1] ss:$4 sm:$0xff] %v143_v14  ;;  %s413_s30 = sshll.u32 %s639_s6, 4  ;;  %s415_s10 = sshll.u32 %s737_s7, 4  ;;  %s414_s30 = int_to_ptr.vmem [resolvable:$true] %s413_s30  ;;  %s416_s10 = int_to_ptr.hbm [resolvable:$true] %s415_s10 }
  0x22   :  { %166 = vst [vmem:[#allocation1 + $0x2] ss:$4 sm:$0xff] %v144_v15 }
  0x23   :  { %168 = vst [vmem:[#allocation1 + $0x3] ss:$4 sm:$0xff] %v145_v16 }
  0x26   :  { %v178_v17 = vld.sshfl [vmem:[#allocation1 + $0x20] sm:$0xff pattern:$0x73625140] }
  0x27   :  { %432 = vmatmul.msk.f32.vlgmr.msra.gmra.mxu2 %vm116_vm0, %v178_v17 }
  0x2a   :  { %v177_v18 = vld.sshfl [vmem:[#allocation1] sm:$0xff pattern:$0x73625140] }
  0x2b   :  { %431 = vmatmul.msk.f32.vlgmr.msra.gmra.mxu1 %vm116_vm0, %v177_v18 }
  0x9d   :  { %v137_v20 = vpop.f32.mrf.mxu0 }
  0x9e   :  { %v138_v21 = vadd.f32 %v450_v19, %v137_v20 }
  0xa0   :  { %141 = vst.msk [vmem:[#allocation2] sm:$0x3] %vm140_vm1, %v138_v21 }
  0xa7   :  { %v221_v22 = vld [vmem:[#allocation2] sm:$0x3] }
  0xa8   :  { %v201_v23 = vpop.f32.mrf.mxu1 }
  0xa9   :  { %v209_v24 = vrot.slane %v201_v23, 2  ;;  %v210_v25 = vrot.slane %v201_v23, 4  ;;  %v222_v26 = vadd.f32 %v221_v22, %v201_v23  ;;  %v211_v27 = vrot.slane %v201_v23, 6 }
  0xaa   :  { %v204_v28 = vpop.f32.mrf.mxu2 }
  0xab   :  { %v223_v29 = vadd.f32 %v221_v22, %v209_v24  ;;  %v224_v30 = vadd.f32 %v221_v22, %v210_v25  ;;  %452 = vtanh.f32 %v222_v26  ;;  %v212_v31 = vrot.slane %v204_v28, 2 }
  0xac   :  { %v226_v32 = vadd.f32 %v221_v22, %v204_v28  ;;  %v225_v33 = vadd.f32 %v221_v22, %v211_v27  ;;  %v213_v35 = vrot.slane %v204_v28, 4  ;;  %v214_v38 = vrot.slane %v204_v28, 6  ;;  %v351_v27 = vld [vmem:[#allocation8] sm:$0x1]  ;;  %v352_v28 = vld [vmem:[#allocation8 + $0x1] sm:$0x1] }
  0xad   :  { %454 = vtanh.f32 %v224_v30  ;;  %v227_v36 = vadd.f32 %v221_v22, %v212_v31  ;;  %vm353_vm10 = vcmp.eq.s32.totalorder %v351_v27, 0  ;;  %vm354_vm11 = vcmp.eq.s32.totalorder %v352_v28, 0 }
  0xae   :  { %456 = vtanh.f32 %v223_v29  ;;  %v228_v40 = vadd.f32 %v221_v22, %v213_v35  ;;  %v229_v46 = vadd.f32 %v221_v22, %v214_v38 }
  0xaf   :  { %458 = vtanh.f32 %v226_v32 }
  0xb0   :  { %460 = vtanh.f32 %v225_v33 }
  0xb1   :  { %v453_v37 = vpop.eup %452  ;;  %462 = vtanh.f32 %v227_v36 }
  0xb2   :  { %v242_v39 = vmul.f32 %v453_v37, %v451_v34  ;;  %464 = vtanh.f32 %v228_v40 }
  0xb3   :  { %v455_v41 = vpop.eup %454  ;;  %466 = vtanh.f32 %v229_v46 }
  0xb4   :  { %v251_v42 = vsel %vm140_vm1, %v242_v39, 0.0  ;;  %v457_v43 = vpop.eup %456  ;;  %v244_v44 = vmul.f32 %v455_v41, %v451_v34 }
  0xb5   :  { %252 = vadd.xlane.f32.xlu0 %v251_v42  ;;  %v459_v45 = vpop.eup %458  ;;  %v243_v50 = vmul.f32 %v457_v43, %v451_v34 }
  0xb6   :  { %v246_v47 = vmul.f32 %v459_v45, %v451_v34  ;;  %v257_v48 = vsel %vm140_vm1, %v244_v44, 0.0  ;;  %v461_v49 = vpop.eup %460 }
  0xb7   :  { %258 = vadd.xlane.f32.xlu1 %v257_v48  ;;  %v463_v52 = vpop.eup %462  ;;  %v245_v53 = vmul.f32 %v461_v49, %v451_v34  ;;  %v254_v54 = vsel %vm140_vm1, %v243_v50, 0.0 }
  0xb8   :  { %v263_v51 = vsel %vm140_vm1, %v246_v47, 0.0  ;;  %v465_v55 = vpop.eup %464  ;;  %v247_v56 = vmul.f32 %v463_v52, %v451_v34 }
  0xb9   :  { %264 = vadd.xlane.f32.xlu2 %v263_v51  ;;  %v260_v57 = vsel %vm140_vm1, %v245_v53, 0.0  ;;  %v467_v58 = vpop.eup %466  ;;  %v248_v59 = vmul.f32 %v465_v55, %v451_v34 }
  0xba   :  { %v266_v60 = vsel %vm140_vm1, %v247_v56, 0.0  ;;  %v249_v61 = vmul.f32 %v467_v58, %v451_v34 }
  0xbb   :  { %v269_v62 = vsel %vm140_vm1, %v248_v59, 0.0 }
  0xbc   :  { %v272_v63 = vsel %vm140_vm1, %v249_v61, 0.0 }
  0xbd   :  { %255 = vadd.xlane.f32.xlu0 %v254_v54 }
  0xbf   :  { %261 = vadd.xlane.f32.xlu1 %v260_v57 }
  0xc1   :  { %267 = vadd.xlane.f32.xlu2 %v266_v60 }
  0xc5   :  { %270 = vadd.xlane.f32.xlu0 %v269_v62 }
  0xc7   :  { %273 = vadd.xlane.f32.xlu1 %v272_v63 }
 0x128   :  { %v253_v0 = vpop.xlane.xlu0 %252 }
 0x129   :  { %v285_v6 = vperm.slane %v253_v0, %v284_v3 }
 0x12a   :  { %v259_v2 = vpop.xlane.xlu1 %258 }
 0x12b   :  { %v287_v8 = vperm.slane %v259_v2, %v284_v3 }
 0x12c   :  { %v265_v4 = vpop.xlane.xlu2 %264 }
 0x12d   :  { %v289_v13 = vperm.slane %v265_v4, %v284_v3 }
 0x130   :  { %v256_v5 = vpop.xlane.xlu0 %255 }
 0x131   :  { %v286_v7 = vperm.slane %v256_v5, %v284_v3 }
 0x132   :  { %v262_v9 = vpop.xlane.xlu1 %261 }
 0x133   :  { %v294_v10 = vsel %vm293_vm2, %v286_v7, %v285_v6  ;;  %v288_v11 = vperm.slane %v262_v9, %v284_v3 }
 0x134   :  { %v296_v12 = vsel %vm295_vm3, %v287_v8, %v294_v10  ;;  %v268_v14 = vpop.xlane.xlu2 %267 }
 0x135   :  { %v298_v15 = vsel %vm297_vm4, %v288_v11, %v296_v12  ;;  %v290_v17 = vperm.slane %v268_v14, %v284_v3 }
 0x136   :  { %v300_v16 = vsel %vm299_vm5, %v289_v13, %v298_v15 }
 0x137   :  { %v302_v20 = vsel %vm301_vm6, %v290_v17, %v300_v16 }
 0x138   :  { %v271_v18 = vpop.xlane.xlu0 %270 }
 0x139   :  { %v291_v19 = vperm.slane %v271_v18, %v284_v3 }
 0x13a   :  { %v274_v21 = vpop.xlane.xlu1 %273 }
 0x13b   :  { %v304_v22 = vsel %vm303_vm7, %v291_v19, %v302_v20  ;;  %v292_v23 = vperm.slane %v274_v21, %v284_v3 }
 0x13d   :  { %v306_v24 = vsel %vm305_vm8, %v292_v23, %v304_v22 }
 0x13e   :  { %308 = vxpose.xlu2.b32.start.end [1/1] (short) (narrow) %v306_v24, 8 }
 0x1d7   :  { %v324_v25 = vpop.trf.xlu2 }
 0x1d8   :  { %v341_v26 = vrot.slane %v324_v25, 1  ;;  %344 = vst.msk [vmem:[#allocation12] sm:$0x1] %vm343_vm9, %v324_v25 }
 0x1da   :  { %345 = vst.msk [vmem:[#allocation12 + $0x1] sm:$0x1] %vm343_vm9, %v341_v26 }
 0x1df   :  { %v349_v29 = vld [vmem:[#allocation12] sm:$0x1] }
 0x1e0   :  { %v355_v30 = vsel %vm353_vm10, -1e+10, %v349_v29 }
 0x1e1   :  { %v357_v31 = vsel %vm343_vm9, %v355_v30, -inf  ;;  %v350_v32 = vld [vmem:[#allocation12 + $0x1] sm:$0x1] }
 0x1e2   :  { %358 = vmax.xlane.f32.xlu0 %v357_v31  ;;  %v356_v33 = vsel %vm354_vm11, -1e+10, %v350_v32 }
 0x1e3   :  { %v360_v34 = vsel %vm343_vm9, %v356_v33, -inf }
 0x1e4   :  { %361 = vmax.xlane.f32.xlu1 %v360_v34 }
 0x255   :  { %v359_v35 = vpop.xlane.xlu0 %358 }
 0x256   :  { %v363_v36 = vsub.f32 %v355_v30, %v359_v35 }
 0x257   :  { %v362_v37 = vpop.xlane.xlu1 %361 }
 0x258   :  { %v365_v38 = vmul.f32 1.442695, %v363_v36  ;;  %v364_v39 = vsub.f32 %v356_v33, %v362_v37 }
 0x25a   :  { %468 = vpow2.f32 %v365_v38  ;;  %v367_v40 = vmul.f32 1.442695, %v364_v39 }
 0x25c   :  { %470 = vpow2.f32 %v367_v40 }
 0x260   :  { %v469_v41 = vpop.eup %468 }
 0x261   :  { %v369_v42 = vsel %vm343_vm9, %v469_v41, 0.0 }
 0x262   :  { %v471_v43 = vpop.eup %470  ;;  %370 = vadd.xlane.f32.xlu0 %v369_v42 }
 0x263   :  { %v372_v44 = vsel %vm343_vm9, %v471_v43, 0.0 }
 0x264   :  { %373 = vadd.xlane.f32.xlu1 %v372_v44 }
 0x2d5   :  { %v371_v45 = vpop.xlane.xlu0 %370 }
 0x2d6   :  { %472 = vrcp.f32 %v371_v45  ;;  %v388_v52 = vand.u32 2147483648, %v371_v45  ;;  %v386_v54 = vand.u32 2147483647, %v371_v45  ;;  %vm382_vm13 = vweird.f32 %v371_v45 }
 0x2d7   :  { %v374_v46 = vpop.xlane.xlu1 %373 }
 0x2d8   :  { %474 = vrcp.f32 %v374_v46  ;;  %v403_v56 = vand.u32 2147483648, %v374_v46  ;;  %v401_v59 = vand.u32 2147483647, %v374_v46  ;;  %v389_v60 = vor.u32 1.1754944e-38, %v388_v52 }
 0x2d9   :  { %vm387_vm0 = vcmp.eq.f32.partialorder %v386_v54, 8.507059e+37  ;;  %vm397_vm1 = vweird.f32 %v374_v46 }
 0x2da   :  { %v404_v0 = vor.u32 1.1754944e-38, %v403_v56  ;;  %vm402_vm3 = vcmp.eq.f32.partialorder %v401_v59, 8.507059e+37 }
 0x2dc   :  { %v473_v47 = vpop.eup %472 }
 0x2dd   :  { %v378_v48 = vmul.f32 %v473_v47, %v371_v45  ;;  %vm383_vm12 = vweird.f32 %v473_v47 }
 0x2de   :  { %v475_v49 = vpop.eup %474  ;;  %vm384_vm15 = vmor %vm382_vm13, %vm383_vm12 }
 0x2df   :  { %v379_v50 = vsub.f32 1.0, %v378_v48  ;;  %v393_v51 = vmul.f32 %v475_v49, %v374_v46  ;;  %vm398_vm14 = vweird.f32 %v475_v49 }
 0x2e0   :  { %vm399_vm2 = vmor %vm397_vm1, %vm398_vm14 }
 0x2e1   :  { %v380_v53 = vmul.f32 %v473_v47, %v379_v50  ;;  %v394_v55 = vsub.f32 1.0, %v393_v51 }
 0x2e3   :  { %v381_v57 = vadd.f32 %v473_v47, %v380_v53  ;;  %v395_v58 = vmul.f32 %v475_v49, %v394_v55 }
 0x2e5   :  { %v385_v61 = vsel %vm384_vm15, %v473_v47, %v381_v57  ;;  %v396_v62 = vadd.f32 %v475_v49, %v395_v58 }
 0x2e6   :  { %v390_v63 = vsel %vm387_vm0, %v389_v60, %v385_v61 }
 0x2e7   :  { %v391_v1 = vmul.f32 %v469_v41, %v390_v63  ;;  %v400_v2 = vsel %vm399_vm2, %v475_v49, %v396_v62 }
 0x2e8   :  { %v405_v3 = vsel %vm402_vm3, %v404_v0, %v400_v2 }
 0x2e9   :  { %407 = vst.msk [vmem:[#allocation12] sm:$0x1] %vm343_vm9, %v391_v1  ;;  %v406_v4 = vmul.f32 %v471_v43, %v405_v3 }
 0x2eb   :  { %408 = vst.msk [vmem:[#allocation12 + $0x1] sm:$0x1] %vm343_vm9, %v406_v4 }
 0x2ec   :  { %421 = dma.vmem_to_hbm [thread:$0]  %s414_s30, 32, %s416_s10, [#allocation5], %s636_s23, %s636_s23, %s637_s24  }
 0x2ed   :  { %626 = dma.done.wait [#allocation5], 32  }
 0x2ee   :  { %627 = vsyncadd [#allocation5], 4294967264 }
 0x2ef   :  { %426 = vsyncpa [#allocation4], 1 }
 0x2f0   :  { %427 = vsyncpa [#allocation7], 1 }
 0x2f1   :  { %428 = vsyncpa [#allocation10], 1 }
 0x2f2   :  { %429 = vsyncpa [#allocation5], 1 }

</bundles_post_ra>
